<compile_context>
chip_gen: v5e
topology: v5e:2x2
jax: 0.10.0
libtpu: 0.0.40
codegen_flags: <defaults>
</compile_context>

<pallas_src>
import jax
import jax.numpy as jnp
from jax import lax
from jax.experimental import pallas as pl
from jax.experimental.pallas import tpu as pltpu


def _round_up(x, m):
    return ((x + m - 1) // m) * m


def _make_critic_kernel(fc3_via_reduce):
    """Kernel factory; `fc3_via_reduce` is a static Python bool."""

    def kernel(s_ref, a_ref, w1s_ref, w1a_ref, b1_ref,
               w2_ref, b2_ref, w3_ref, b3_ref, o_ref):
        # fc1 on the (virtually) concatenated input:
        #   concat([s, a], 1) @ W1 == s @ W1_state + a @ W1_action
        h1 = jnp.dot(s_ref[...], w1s_ref[...], preferred_element_type=jnp.float32)
        h1 = h1 + jnp.dot(a_ref[...], w1a_ref[...],
                          preferred_element_type=jnp.float32)
        h1 = jnp.maximum(h1 + b1_ref[...], 0.0)

        # fc2 + ReLU (bf16 operands into the MXU, f32 accumulation).
        h2 = jnp.dot(h1.astype(w2_ref.dtype), w2_ref[...],
                     preferred_element_type=jnp.float32) + b2_ref[...]
        h2 = jnp.maximum(h2, 0.0)

        if fc3_via_reduce:
            # out_size == 1: fc3 on VPU/XLU -- broadcast-multiply by the single
            # f32 w3 row and lane-reduce.  Writes a (tb, 1) block, so HBM
            # writeback is out_size lanes, not a 128-wide padded store.
            out = jnp.sum(h2 * w3_ref[...], axis=-1, keepdims=True) + b3_ref[...]
        else:
            # General out_size: MXU dot, output padded to a multiple of 128.
            out = jnp.dot(h2.astype(w3_ref.dtype), w3_ref[...],
                          preferred_element_type=jnp.float32) + b3_ref[...]
        o_ref[...] = out.astype(o_ref.dtype)

    return kernel


def critic_forward(state, action, params, *, block_b=1024,
                   compute_dtype=jnp.bfloat16):
    """state: (B, state_dim), action: (B, action_dim) -> (B, output_size)."""
    w1, b1, w2, b2, w3, b3 = params          # (in, out) layout; biases (1, out)
    B, state_dim = state.shape
    action_dim = action.shape[1]
    hidden = w1.shape[1]
    out_size = w3.shape[1]

    # ---- parameter prep (tiny, wrapper-side) -------------------------------
    hpad = _round_up(hidden, 128)
    dh = hpad - hidden
    # Fuse the concat by splitting W1 along its input rows; pad hidden to 128.
    w1s = jnp.pad(w1[:state_dim, :], ((0, 0), (0, dh))).astype(compute_dtype)
    w1a = jnp.pad(w1[state_dim:, :], ((0, 0), (0, dh))).astype(compute_dtype)
    b1p = jnp.pad(b1, ((0, 0), (0, dh))).astype(jnp.float32)
    w2p = jnp.pad(w2, ((0, dh), (0, dh))).astype(compute_dtype)
    b2p = jnp.pad(b2, ((0, 0), (0, dh))).astype(jnp.float32)

    fc3_via_reduce = (out_size == 1)
    if fc3_via_reduce:
        w3k = jnp.pad(w3, ((0, dh), (0, 0))).T.astype(jnp.float32)    # (1, hpad)
        b3k = b3.astype(jnp.float32)                                   # (1, 1)
        out_cols = out_size
    else:
        out_cols = _round_up(out_size, 128)
        w3k = jnp.pad(w3, ((0, dh), (0, out_cols - out_size))).astype(compute_dtype)
        b3k = jnp.pad(b3, ((0, 0), (0, out_cols - out_size))).astype(jnp.float32)

    # ---- activation prep / batch tiling ------------------------------------
    s_in = state.astype(compute_dtype)
    a_in = action.astype(compute_dtype)

    sub = 16 if jnp.dtype(compute_dtype).itemsize < 4 else 8   # sublane packing
    # >= 2 grid steps so the "parallel" batch axis can split across the two
    # TensorCores on v7x (harmless on v5e/v6e, which have one TC per chip).
    tb = min(block_b, _round_up(-(-B // 2), sub))
    tb = _round_up(max(tb, sub), sub)
    b_pad = _round_up(B, tb)
    if b_pad // tb < 2:
        b_pad = 2 * tb
    if b_pad != B:
        s_in = jnp.pad(s_in, ((0, b_pad - B), (0, 0)))
        a_in = jnp.pad(a_in, ((0, b_pad - B), (0, 0)))

    grid = (b_pad // tb,)

    # Activations: tiled over batch (double-buffered by Pallas).
    # Weights/biases: constant index_map -> stay resident in VMEM across steps.
    act_spec = lambda cols: pl.BlockSpec((tb, cols), lambda i: (i, 0))
    res_spec = lambda shape: pl.BlockSpec(shape, lambda i: (0, 0))
    # TODO(synk): if hidden is ever scaled up (>=1024), single-buffer the
    # resident weight specs (pipeline_mode=pl.Buffered(1)) to halve their VMEM.

    weights = (w1s, w1a, b1p, w2p, b2p, w3k, b3k)
    flops = 2 * B * ((state_dim + action_dim) * hidden
                     + hidden * hidden + hidden * out_size)
    bytes_accessed = (
        b_pad * (state_dim + action_dim) * jnp.dtype(compute_dtype).itemsize
        + b_pad * out_cols * 4
        + sum(int(w.size) * w.dtype.itemsize for w in weights))
    cost = pl.CostEstimate(flops=flops, transcendentals=0,
                           bytes_accessed=bytes_accessed)

    out_padded = pl.pallas_call(
        _make_critic_kernel(fc3_via_reduce),
        out_shape=jax.ShapeDtypeStruct((b_pad, out_cols), jnp.float32),
        grid=grid,
        in_specs=[
            act_spec(state_dim),                  # state tile
            act_spec(action_dim),                 # action tile
            res_spec((state_dim, hpad)),          # W1_state
            res_spec((action_dim, hpad)),         # W1_action
            res_spec((1, hpad)),                  # b1
            res_spec((hpad, hpad)),               # W2
            res_spec((1, hpad)),                  # b2
            res_spec(tuple(w3k.shape)),           # W3 (f32 row for reduce path)
            res_spec(tuple(b3k.shape)),           # b3
        ],
        out_specs=act_spec(out_cols),
        compiler_params=pltpu.CompilerParams(
            dimension_semantics=("parallel",),
        ),
        cost_estimate=cost,
    )(s_in, a_in, w1s, w1a, b1p, w2p, b2p, w3k, b3k)

    # Slice back to the logical batch / output size.
    return out_padded[:B, :out_size]


def init_params(key, input_size, hidden_size, output_size):
    """nn.Linear-style init (uniform +/- 1/sqrt(fan_in)); weights are (in, out)."""
    ks = jax.random.split(key, 6)

    def lin(kw, kb, fan_in, fan_out):
        bound = 1.0 / jnp.sqrt(fan_in)
        w = jax.random.uniform(kw, (fan_in, fan_out), jnp.float32, -bound, bound)
        b = jax.random.uniform(kb, (1, fan_out), jnp.float32, -bound, bound)
        return w, b

    w1, b1 = lin(ks[0], ks[1], input_size, hidden_size)
    w2, b2 = lin(ks[2], ks[3], hidden_size, hidden_size)
    w3, b3 = lin(ks[4], ks[5], hidden_size, output_size)
    return (w1, b1, w2, b2, w3, b3)


def _reference_f32(state, action, params):
    """Pure-f32 PyTorch-equivalent forward (HIGHEST precision dots)."""
    w1, b1, w2, b2, w3, b3 = params
    x = jnp.concatenate([state, action], axis=1)
    h1 = jnp.maximum(jnp.dot(x, w1, precision=lax.Precision.HIGHEST) + b1, 0.0)
    h2 = jnp.maximum(jnp.dot(h1, w2, precision=lax.Precision.HIGHEST) + b2, 0.0)
    return jnp.dot(h2, w3, precision=lax.Precision.HIGHEST) + b3


def _reference_matched(state, action, params, state_dim,
                       compute_dtype=jnp.bfloat16):
    """Mirrors the kernel's precision choices (bf16 operands, f32 accumulation,
    split-W1 fc1, f32 VPU fc3) so a tight tolerance is meaningful."""
    w1, b1, w2, b2, w3, b3 = params
    s = state.astype(compute_dtype)
    a = action.astype(compute_dtype)
    h1 = (jnp.dot(s, w1[:state_dim].astype(compute_dtype),
                  preferred_element_type=jnp.float32)
          + jnp.dot(a, w1[state_dim:].astype(compute_dtype),
                    preferred_element_type=jnp.float32) + b1)
    h1 = jnp.maximum(h1, 0.0)
    h2 = jnp.dot(h1.astype(compute_dtype), w2.astype(compute_dtype),
                 preferred_element_type=jnp.float32) + b2
    h2 = jnp.maximum(h2, 0.0)
    return jnp.sum(h2 * w3[:, 0][None, :], axis=-1, keepdims=True) + b3


if __name__ == "__main__":
    key = jax.random.PRNGKey(0)
    k_state, k_action, k_params = jax.random.split(key, 3)

    batch = 2
    state_dim = 24
    action_dim = 8
    input_size = state_dim + action_dim   # fc1 consumes concat([state, action], 1)
    hidden_size = 32
    output_size = 1

    state = jax.random.normal(k_state, (batch, state_dim), jnp.float32)
    action = jax.random.normal(k_action, (batch, action_dim), jnp.float32)
    params = init_params(k_params, input_size, hidden_size, output_size)

    out = critic_forward(state, action, params)
    out = jax.block_until_ready(out)
    assert out.shape == (batch, output_size)

    # Tight check vs. a reference with matching precision choices.
    ref_m = _reference_matched(state, action, params, state_dim)
    assert jnp.allclose(out, ref_m, atol=1e-3, rtol=1e-3), (
        float(jnp.max(jnp.abs(out - ref_m))))

    # Loose check vs. the pure-f32 PyTorch-equivalent forward
    # (difference is bf16 storage rounding only).
    ref_f = _reference_f32(state, action, params)
    assert jnp.allclose(out, ref_f, atol=5e-2, rtol=5e-2), (
        float(jnp.max(jnp.abs(out - ref_f))))

    print("KERNEL_OK")
</pallas_src>

<mosaic_0001>
module attributes {stable_mosaic.version = 11 : i64} {
  func.func @kernel(%arg0: i32, %arg1: memref<16x24xbf16, #tpu.memory_space<vmem>>, %arg2: memref<16x8xbf16, #tpu.memory_space<vmem>>, %arg3: memref<24x128xbf16, #tpu.memory_space<vmem>>, %arg4: memref<8x128xbf16, #tpu.memory_space<vmem>>, %arg5: memref<1x128xf32, #tpu.memory_space<vmem>>, %arg6: memref<128x128xbf16, #tpu.memory_space<vmem>>, %arg7: memref<1x128xf32, #tpu.memory_space<vmem>>, %arg8: memref<1x128xf32, #tpu.memory_space<vmem>>, %arg9: memref<1x1xf32, #tpu.memory_space<vmem>>, %arg10: memref<16x1xf32, #tpu.memory_space<vmem>>) attributes {dimension_semantics = [#tpu.dimension_semantics<parallel>], iteration_bounds = array<i64: 2>, scalar_prefetch = 0 : i64, scratch_operands = 0 : i64, tpu.core_type = #tpu.core_type<tc>, window_params = [{transform_indices = @transform_0, window_bounds = array<i64: 16, 24>}, {transform_indices = @transform_1, window_bounds = array<i64: 16, 8>}, {pipeline_mode = #tpu.pipeline_mode<synchronous>, transform_indices = @transform_2, window_bounds = array<i64: 24, 128>}, {pipeline_mode = #tpu.pipeline_mode<synchronous>, transform_indices = @transform_3, window_bounds = array<i64: 8, 128>}, {pipeline_mode = #tpu.pipeline_mode<synchronous>, transform_indices = @transform_4, window_bounds = array<i64: 1, 128>}, {pipeline_mode = #tpu.pipeline_mode<synchronous>, transform_indices = @transform_5, window_bounds = array<i64: 128, 128>}, {pipeline_mode = #tpu.pipeline_mode<synchronous>, transform_indices = @transform_6, window_bounds = array<i64: 1, 128>}, {pipeline_mode = #tpu.pipeline_mode<synchronous>, transform_indices = @transform_7, window_bounds = array<i64: 1, 128>}, {pipeline_mode = #tpu.pipeline_mode<synchronous>, transform_indices = @transform_8, window_bounds = array<i64: 1, 1>}, {transform_indices = @transform_9, window_bounds = array<i64: 16, 1>}]} {
    %c0 = arith.constant 0 : index
    %c0_0 = arith.constant 0 : index
    %0 = vector.load %arg1[%c0, %c0_0] : memref<16x24xbf16, #tpu.memory_space<vmem>>, vector<16x24xbf16>
    %c0_1 = arith.constant 0 : index
    %c0_2 = arith.constant 0 : index
    %1 = vector.load %arg3[%c0_1, %c0_2] : memref<24x128xbf16, #tpu.memory_space<vmem>>, vector<24x128xbf16>
    %cst = arith.constant dense<0.000000e+00> : vector<16x128xf32>
    %2 = tpu.matmul %0, %1, %cst {dimension_numbers = #tpu.dot_dimension_numbers<[1], [0], [0], [1], [0, 0, 1, 1], [], []>} : vector<16x24xbf16>, vector<24x128xbf16>, vector<16x128xf32> -> vector<16x128xf32>
    %c0_3 = arith.constant 0 : index
    %c0_4 = arith.constant 0 : index
    %3 = vector.load %arg2[%c0_3, %c0_4] : memref<16x8xbf16, #tpu.memory_space<vmem>>, vector<16x8xbf16>
    %c0_5 = arith.constant 0 : index
    %c0_6 = arith.constant 0 : index
    %4 = vector.load %arg4[%c0_5, %c0_6] : memref<8x128xbf16, #tpu.memory_space<vmem>>, vector<8x128xbf16>
    %cst_7 = arith.constant dense<0.000000e+00> : vector<16x128xf32>
    %5 = tpu.matmul %3, %4, %cst_7 {dimension_numbers = #tpu.dot_dimension_numbers<[1], [0], [0], [1], [0, 0, 1, 1], [], []>} : vector<16x8xbf16>, vector<8x128xbf16>, vector<16x128xf32> -> vector<16x128xf32>
    %6 = arith.addf %2, %5 : vector<16x128xf32>
    %c0_8 = arith.constant 0 : index
    %c0_9 = arith.constant 0 : index
    %7 = vector.load %arg5[%c0_8, %c0_9] : memref<1x128xf32, #tpu.memory_space<vmem>>, vector<1x128xf32>
    %8 = vector.broadcast %7 : vector<1x128xf32> to vector<16x128xf32>
    %9 = arith.addf %6, %8 : vector<16x128xf32>
    %cst_10 = arith.constant 0.000000e+00 : f32
    %10 = vector.broadcast %cst_10 : f32 to vector<16x128xf32>
    %11 = arith.maximumf %9, %10 : vector<16x128xf32>
    %12 = arith.truncf %11 : vector<16x128xf32> to vector<16x128xbf16>
    %c0_11 = arith.constant 0 : index
    %c0_12 = arith.constant 0 : index
    %13 = vector.load %arg6[%c0_11, %c0_12] : memref<128x128xbf16, #tpu.memory_space<vmem>>, vector<128x128xbf16>
    %cst_13 = arith.constant dense<0.000000e+00> : vector<16x128xf32>
    %14 = tpu.matmul %12, %13, %cst_13 {dimension_numbers = #tpu.dot_dimension_numbers<[1], [0], [0], [1], [0, 0, 1, 1], [], []>} : vector<16x128xbf16>, vector<128x128xbf16>, vector<16x128xf32> -> vector<16x128xf32>
    %c0_14 = arith.constant 0 : index
    %c0_15 = arith.constant 0 : index
    %15 = vector.load %arg7[%c0_14, %c0_15] : memref<1x128xf32, #tpu.memory_space<vmem>>, vector<1x128xf32>
    %16 = vector.broadcast %15 : vector<1x128xf32> to vector<16x128xf32>
    %17 = arith.addf %14, %16 : vector<16x128xf32>
    %cst_16 = arith.constant 0.000000e+00 : f32
    %18 = vector.broadcast %cst_16 : f32 to vector<16x128xf32>
    %19 = arith.maximumf %17, %18 : vector<16x128xf32>
    %c0_17 = arith.constant 0 : index
    %c0_18 = arith.constant 0 : index
    %20 = vector.load %arg8[%c0_17, %c0_18] : memref<1x128xf32, #tpu.memory_space<vmem>>, vector<1x128xf32>
    %21 = vector.broadcast %20 : vector<1x128xf32> to vector<16x128xf32>
    %22 = arith.mulf %19, %21 : vector<16x128xf32>
    %cst_19 = arith.constant dense<0.000000e+00> : vector<16xf32>
    %23 = vector.multi_reduction <add>, %22, %cst_19 [1] : vector<16x128xf32> to vector<16xf32>
    %24 = vector.shape_cast %23 : vector<16xf32> to vector<16x1xf32>
    %c0_20 = arith.constant 0 : index
    %c0_21 = arith.constant 0 : index
    %25 = vector.load %arg9[%c0_20, %c0_21] : memref<1x1xf32, #tpu.memory_space<vmem>>, vector<1x1xf32>
    %26 = vector.broadcast %25 : vector<1x1xf32> to vector<16x1xf32>
    %27 = arith.addf %24, %26 : vector<16x1xf32>
    %c0_22 = arith.constant 0 : index
    %c0_23 = arith.constant 0 : index
    %28 = vector.load %arg10[%c0_22, %c0_23] : memref<16x1xf32, #tpu.memory_space<vmem>>, vector<16x1xf32>
    tpu.vector_store %arg10[%c0_22, %c0_23], %27 {strides = array<i32>} : memref<16x1xf32, #tpu.memory_space<vmem>>, vector<16x1xf32>,
    return
  }
  func.func @transform_0(%arg0: i32) -> (i32, i32) {
    %c0_i32 = arith.constant 0 : i32
    %c0_i32_0 = arith.constant 0 : i32
    return %arg0, %c0_i32 : i32, i32
  }
  func.func @transform_1(%arg0: i32) -> (i32, i32) {
    %c0_i32 = arith.constant 0 : i32
    %c0_i32_0 = arith.constant 0 : i32
    return %arg0, %c0_i32 : i32, i32
  }
  func.func @transform_2(%arg0: i32) -> (i32, i32) {
    %c0_i32 = arith.constant 0 : i32
    %c0_i32_0 = arith.constant 0 : i32
    %c0_i32_1 = arith.constant 0 : i32
    return %c0_i32, %c0_i32_0 : i32, i32
  }
  func.func @transform_3(%arg0: i32) -> (i32, i32) {
    %c0_i32 = arith.constant 0 : i32
    %c0_i32_0 = arith.constant 0 : i32
    %c0_i32_1 = arith.constant 0 : i32
    return %c0_i32, %c0_i32_0 : i32, i32
  }
  func.func @transform_4(%arg0: i32) -> (i32, i32) {
    %c0_i32 = arith.constant 0 : i32
    %c0_i32_0 = arith.constant 0 : i32
    %c0_i32_1 = arith.constant 0 : i32
    return %c0_i32, %c0_i32_0 : i32, i32
  }
  func.func @transform_5(%arg0: i32) -> (i32, i32) {
    %c0_i32 = arith.constant 0 : i32
    %c0_i32_0 = arith.constant 0 : i32
    %c0_i32_1 = arith.constant 0 : i32
    return %c0_i32, %c0_i32_0 : i32, i32
  }
  func.func @transform_6(%arg0: i32) -> (i32, i32) {
    %c0_i32 = arith.constant 0 : i32
    %c0_i32_0 = arith.constant 0 : i32
    %c0_i32_1 = arith.constant 0 : i32
    return %c0_i32, %c0_i32_0 : i32, i32
  }
  func.func @transform_7(%arg0: i32) -> (i32, i32) {
    %c0_i32 = arith.constant 0 : i32
    %c0_i32_0 = arith.constant 0 : i32
    %c0_i32_1 = arith.constant 0 : i32
    return %c0_i32, %c0_i32_0 : i32, i32
  }
  func.func @transform_8(%arg0: i32) -> (i32, i32) {
    %c0_i32 = arith.constant 0 : i32
    %c0_i32_0 = arith.constant 0 : i32
    %c0_i32_1 = arith.constant 0 : i32
    return %c0_i32, %c0_i32_0 : i32, i32
  }
  func.func @transform_9(%arg0: i32) -> (i32, i32) {
    %c0_i32 = arith.constant 0 : i32
    %c0_i32_0 = arith.constant 0 : i32
    return %arg0, %c0_i32 : i32, i32
  }
}

</mosaic_0001>

<bundles_post_ra>
// kernel: tpu_custom_call.1
= control target key start
LH: loop header
LB: loop body
LE: loop exit
PB: predicated region body
PF: predicated region fallthrough
CT: control target
= control target key end

     0   :  { %s880_s0 = inlined_call_operand.vmem [shape: bf16[32,24], index: 0, kind: input, shape index: {}]   ;;  %s881_s1 = inlined_call_operand.vmem [shape: bf16[32,8], index: 1, kind: input, shape index: {}]   ;;  %s882_s2 = inlined_call_operand.vmem [shape: bf16[24,128], index: 2, kind: input, shape index: {}]   ;;  %s883_s3 = inlined_call_operand.vmem [shape: bf16[8,128], index: 3, kind: input, shape index: {}]   ;;  %s884_s4 = inlined_call_operand.vmem [shape: f32[1,128], index: 4, kind: input, shape index: {}]   ;;  %s885_s5 = inlined_call_operand.hbm [shape: bf16[128,128], index: 5, kind: input, shape index: {}]   ;;  %s886_s6 = inlined_call_operand.vmem [shape: f32[1,128], index: 6, kind: input, shape index: {}]   ;;  %s887_s7 = inlined_call_operand.vmem [shape: f32[1,128], index: 7, kind: input, shape index: {}]   ;;  %s888_s8 = inlined_call_operand.<no memory space> [shape: f32[1,1], index: 8, kind: input, shape index: {}]   ;;  %s889_s9 = inlined_call_operand.vmem [shape: f32[32,1], index: 9, kind: output, shape index: {}]  }
   0x1   :  { %v14_v0 = vstv %s888_s8 }
   0x2   :  { %15 = vst [vmem:[#allocation2] sm:$0x1] %v14_v0 }
   0x3   :  { %16 = vsyncpa [#allocation4], 0  ;;  %s835_s11 = smov 0  }
   0x4 LB: > { %s272_s14 = sshll.u32 %s885_s5, 4  ;;  %s640_s15 = sadd.s32 4294967295, %s777_s11   ;;  %s777_s11 = sphi %s835_s11, %s22_s11   ;;  %s273_s14 = int_to_ptr.hbm [resolvable:$true] %s272_s14 }
   0x5   : > { %p642_p0 = scmp.ge.s32.totalorder %s777_s11, 1  ;;  %p252_p1 = scmp.lt.s32.totalorder %s777_s11, 3 }
   0x6   : > { %p720_p2 = scmp.eq.s32.totalorder %s640_s15, 0  ;;  %s779_s8 = smov [#allocation3]  }
   0x7   : > { %p253_p3 = pnand %p642_p0, %p252_p1  ;;  %s274_s16 = sshll.u32 %s779_s8, 4  ;;  %s275_s16 = int_to_ptr.vmem [resolvable:$true] %s274_s16 }
   0x8   : > { %s780_s17 = smov 64   ;;  %s781_s18 = smov 4  }
   0x9   : > { %p716_p4 = pneg %p253_p3  ;;  %317 = sbr.rel (%p253_p3) target bundleno = 436 (0x1b4), region = 56 }
   0xb   : > { %p717_p5 = pnand %p720_p2, %p716_p4 }
   0xd   : > { %719 = dma.hbm_to_vmem [thread:$0]  (!%p717_p5), %s273_s14, 1024, %s275_s16, [#allocation4], %s780_s17, %s780_s17, %s781_s18  }
   0xe   : > { %772 = dma.done.wait (%p720_p2), [#allocation4], 1024  }
   0xf   : > { %774 = vsyncadd (%p720_p2), [#allocation4], 4294966272  ;;  %s647_s19 = sshll.u32 %s640_s15, 1  ;;  %vm395_vm0 = vcmask 1043456   ;;  %v385_v1 = vld [vmem:[%s883_s3] sm:$0xf] }
  0x10   : > { %p360_p6 = scmp.lt.s32.totalorder %s647_s19, 3  ;;  %v382_v2 = vld [vmem:[%s882_s2 + $0x8] sm:$0xf]  ;;  %v397_v3 = vsel %vm395_vm0, %v385_v1, 0  ;;  %v711_v6 = vld [vmem:[#allocation3 + $0x38] sm:$0xff]  ;;  %vm391_vm1 = vcmask 64512  }
  0x11   : > { %v423_v5 = vunpack.c.l.b16 %v382_v2  ;;  %406 = vmatpush.bf16.msra.mxu0 %v397_v3  ;;  %525 = vmatpush.bf16.msra.mxu2 %v711_v6  ;;  %v710_v8 = vld [vmem:[#allocation3 + $0x30] sm:$0xff]  ;;  %v702_v10 = vld [vmem:[%s882_s2] sm:$0xff]  ;;  %vm427_vm2 = vcmask 195584   ;;  %v709_v12 = vld [vmem:[#allocation3 + $0x28] sm:$0xff]  ;;  %vm557_vm3 = vcmask 7168  }
  0x12   : > { %s891_s19 = smov (!%p360_p6, %s647_s19), 3  ;;  %v708_v13 = vld [vmem:[#allocation3 + $0x20] sm:$0xff]  ;;  %v707_v14 = vld [vmem:[#allocation3 + $0x18] sm:$0xff]  ;;  %v706_v15 = vld [vmem:[#allocation3 + $0x10] sm:$0xff] }
  0x13   : > { %s648_s20 = sshll.u32 %s891_s19, 2  ;;  %v425_v7 = vpack.c.b16 %v423_v5, %v423_v5  ;;  %v705_v16 = vld [vmem:[#allocation3 + $0x8] sm:$0xff]  ;;  %v704_v17 = vld [vmem:[#allocation3] sm:$0xff]  ;;  %v733_v21 = vld [vmem:[%s884_s4] ss:$0 sm:$0xff]  ;;  %s652_s18 = sshll.u32 %s891_s19, 3 }
  0x14   : > { %s369_s23 = scalar_lea.vmem %s881_s1, %s648_s20  ;;  %s363_s12 = scalar_lea.vmem %s880_s0, %s648_s20  ;;  %v734_v30 = vld [vmem:[%s886_s6] ss:$0 sm:$0xff] }
  0x15   : > { %v703_v4 = vld [vmem:[%s369_s23] sm:$0xff]  ;;  %v432_v9 = vsel %vm395_vm0, %v425_v7, 0  ;;  %526 = vmatpush.bf16.msra.mxu2 %v710_v8  ;;  %s375_s22 = scalar_lea.vmem %s889_s9, %s652_s18 }
  0x16   : > { %657 = vmatmul.msk.bf16.vlgmr.msra.gmra.mxu0 %vm391_vm1, %v703_v4  ;;  %440 = vmatpush.bf16.msra.mxu1 %v432_v9  ;;  %v701_v11 = vld [vmem:[%s363_s12] sm:$0xff] }
  0x17   : > { %v735_v33 = vld [vmem:[%s887_s7] ss:$0 sm:$0xff] }
  0x18   : > { %v736_v40 = vld [vmem:[#allocation2] ss:$0 sm:$0xff] }
  0x19   : > { %527 = vmatpush.bf16.msra.mxu2 %v709_v12 }
  0x1a   : > { %441 = vmatpush.bf16.msra.mxu1 %v702_v10 }
  0x1d   : > { %666 = vmatmul.msk.bf16.vlgmr.msra.gmra.mxu1 %vm427_vm2, %v701_v11  ;;  %528 = vmatpush.bf16.msra.mxu2 %v708_v13 }
  0x21   : > { %529 = vmatpush.bf16.msra.mxu2 %v707_v14 }
  0x25   : > { %530 = vmatpush.bf16.msra.mxu2 %v706_v15 }
  0x29   : > { %531 = vmatpush.bf16.msra.mxu2 %v705_v16 }
  0x2d   : > { %532 = vmatpush.bf16.msra.mxu2 %v704_v17 }
  0x93   : > { %v408_v18 = vpop.f32.mrf.mxu0 }
  0x9a   : > { %v443_v19 = vpop.f32.mrf.mxu1 }
  0x9b   : > { %v444_v20 = vadd.f32 %v443_v19, %v408_v18  ;;  %v410_v22 = vpop.f32.mrf.mxu0 }
  0x9d   : > { %v452_v24 = vadd.f32 %v733_v21, %v444_v20 }
  0x9f   : > { %v454_v27 = vmax.f32 %v452_v24, 0.0 }
  0xa2   : > { %v445_v23 = vpop.f32.mrf.mxu1 }
  0xa3   : > { %v446_v25 = vadd.f32 %v445_v23, %v410_v22 }
  0xa5   : > { %v453_v26 = vadd.f32 %v733_v21, %v446_v25 }
  0xa7   : > { %v455_v28 = vmax.f32 %v453_v26, 0.0 }
  0xa9   : > { %v456_v29 = vpack.c.bf16 %v455_v28, %v454_v27 }
  0xab   : > { %533 = vmatmul.bf16.vlgmr.msra.gmra.mxu2 %v456_v29 }
 0x12e   : > { %v534_v31 = vpop.f32.mrf.mxu2 }
 0x12f   : > { %v535_v32 = vadd.f32 %v734_v30, %v534_v31 }
 0x131   : > { %v539_v34 = vmax.f32 %v535_v32, 0.0 }
 0x133   : > { %v545_v35 = vmul.f32 %v735_v33, %v539_v34 }
 0x135   : > { %547 = vadd.xlane.f32.xlu0 %v545_v35 }
 0x136   : > { %v536_v36 = vpop.f32.mrf.mxu2 }
 0x137   : > { %v537_v37 = vadd.f32 %v734_v30, %v536_v36 }
 0x139   : > { %v540_v38 = vmax.f32 %v537_v37, 0.0 }
 0x13b   : > { %v546_v39 = vmul.f32 %v735_v33, %v540_v38 }
 0x13d   : > { %549 = vadd.xlane.f32.xlu0 %v546_v39 }
 0x1a8   : > { %v548_v41 = vpop.xlane.xlu0 %547 }
 0x1a9   : > { %v555_v42 = vadd.f32 %v736_v40, %v548_v41 }
 0x1ab   : > { %558 = vst.msk [vmem:[%s375_s22] sm:$0xff] %vm557_vm3, %v555_v42 }
 0x1b0   : > { %v550_v43 = vpop.xlane.xlu0 %549 }
 0x1b1   : > { %v556_v44 = vadd.f32 %v736_v40, %v550_v43 }
 0x1b3   : > { %559 = vst.msk [vmem:[%s375_s22 + $0x8] sm:$0xff] %vm557_vm3, %v556_v44 }
 0x1b4 PF: > { %s22_s11 = sadd.s32 1, %s777_s11  }
 0x1b5   : > { %p19_p7 = scmp.ge.s32.totalorder %s22_s11, 4  }
 0x1b7   :  { %21 = sbr.rel (!%p19_p7) target bundleno = 4 (0x4), region = 94 }
 0x1bc   :  { %582 = vsyncpa [#allocation4], 1 }
 0x1bd   :  { %584 = vsyncpa [#allocation4 + $0x1], 1 }

</bundles_post_ra>
